<compile_context>
chip_gen: v7x
topology: tpu7x:2x2x1
jax: 0.10.0
libtpu: 0.0.40
codegen_flags: <defaults>
</compile_context>

<pallas_src>
import functools

import jax
import jax.numpy as jnp
from jax import lax
from jax.experimental import pallas as pl
from jax.experimental.pallas import tpu as pltpu

HID = 128            # hidden_dim of the PyTorch module (fixed, lane-dense)
BN_EPS = 1e-5
VMEM_LIMIT = 32 * 1024 * 1024
TILE_B_PREF = 512    # preferred batch tile (f32)


def _round_up(n, m):
    return ((n + m - 1) // m) * m


# --------------------------------------------------------------------------
# Kernels
# --------------------------------------------------------------------------
def _mask_rows(h, nvalid):
    """Zero out batch rows >= nvalid (only traced when batch padding exists)."""
    if nvalid is None:
        return h
    tb = h.shape[0]
    row = pl.program_id(0) * tb + lax.broadcasted_iota(jnp.int32, h.shape, 0)
    return jnp.where(row < nvalid, h, 0.0)


def _seg_linear_kernel(nvalid, x_ref, w_ref, vec_ref, a_ref, st_ref):
    """h = ReLU(x @ W + b); emit h per-tile and accumulate sum / sumsq."""
    @pl.when(pl.program_id(0) == 0)
    def _init():
        st_ref[...] = jnp.zeros_like(st_ref)

    h = jnp.dot(x_ref[...], w_ref[...], preferred_element_type=jnp.float32)
    h = jnp.maximum(h + vec_ref[0:1, :], 0.0)
    a_ref[...] = h

    hm = _mask_rows(h, nvalid)
    st_ref[0:1, :] = st_ref[0:1, :] + jnp.sum(hm, axis=0, keepdims=True)
    st_ref[1:2, :] = st_ref[1:2, :] + jnp.sum(hm * hm, axis=0, keepdims=True)


def _seg_gen_tail_kernel(nvalid, x_ref, w_ref, vec_ref, a_ref, st_ref):
    """(BN2-folded Lin_g3 + ReLU) -> Lin_g4 (y_fake, 128-padded)
       -> Lin_d1 + ReLU; accumulate discriminator-BN stats."""
    @pl.when(pl.program_id(0) == 0)
    def _init():
        st_ref[...] = jnp.zeros_like(st_ref)

    h = jnp.dot(x_ref[...], w_ref[0], preferred_element_type=jnp.float32)
    h = jnp.maximum(h + vec_ref[0:1, :], 0.0)
    y = jnp.dot(h, w_ref[1], preferred_element_type=jnp.float32) + vec_ref[1:2, :]
    hd = jnp.dot(y, w_ref[2], preferred_element_type=jnp.float32)
    hd = jnp.maximum(hd + vec_ref[2:3, :], 0.0)
    a_ref[...] = hd

    hm = _mask_rows(hd, nvalid)
    st_ref[0:1, :] = st_ref[0:1, :] + jnp.sum(hm, axis=0, keepdims=True)
    st_ref[1:2, :] = st_ref[1:2, :] + jnp.sum(hm * hm, axis=0, keepdims=True)


def _seg_disc_tail_kernel(x_ref, w_ref, vec_ref, o_ref):
    """(BN_d-folded Lin_d2 + ReLU) -> adv Linear + Sigmoid, lane-dense output."""
    h = jnp.dot(x_ref[...], w_ref[0], preferred_element_type=jnp.float32)
    h = jnp.maximum(h + vec_ref[0:1, :], 0.0)
    logits = jnp.dot(h, w_ref[1], preferred_element_type=jnp.float32) + vec_ref[1:2, :]
    o_ref[...] = jax.nn.sigmoid(logits)


# --------------------------------------------------------------------------
# pallas_call wrappers
# --------------------------------------------------------------------------
def _run_stats_seg(kernel, nvalid, x, w, vecs, tile_b, n_tiles):
    body = functools.partial(kernel, nvalid)
    w_spec = pl.BlockSpec(w.shape, lambda i: (0,) * w.ndim)
    return pl.pallas_call(
        body,
        out_shape=(jax.ShapeDtypeStruct((x.shape[0], HID), jnp.float32),
                   jax.ShapeDtypeStruct((8, HID), jnp.float32)),
        grid=(n_tiles,),
        in_specs=[pl.BlockSpec((tile_b, HID), lambda i: (i, 0)),
                  w_spec,
                  pl.BlockSpec((8, HID), lambda i: (0, 0))],
        out_specs=(pl.BlockSpec((tile_b, HID), lambda i: (i, 0)),
                   pl.BlockSpec((8, HID), lambda i: (0, 0))),
        compiler_params=pltpu.CompilerParams(
            dimension_semantics=("arbitrary",),       # stats accumulator -> sequential
            vmem_limit_bytes=VMEM_LIMIT),
    )(x, w, vecs)


def _run_final_seg(x, w, vecs, tile_b, n_tiles):
    return pl.pallas_call(
        _seg_disc_tail_kernel,
        out_shape=jax.ShapeDtypeStruct((x.shape[0], HID), jnp.float32),
        grid=(n_tiles,),
        in_specs=[pl.BlockSpec((tile_b, HID), lambda i: (i, 0)),
                  pl.BlockSpec(w.shape, lambda i: (0, 0, 0)),
                  pl.BlockSpec((8, HID), lambda i: (0, 0))],
        out_specs=pl.BlockSpec((tile_b, HID), lambda i: (i, 0)),
        compiler_params=pltpu.CompilerParams(
            dimension_semantics=("parallel",),        # no cross-tile state -> megacore
            vmem_limit_bytes=VMEM_LIMIT),
    )(x, w, vecs)


# --------------------------------------------------------------------------
# Forward pass
# --------------------------------------------------------------------------
def _bn_fold(stats, n, gamma, beta):
    """Training-mode BN (biased var) expressed as scale s / shift t."""
    mean = stats[0] / n
    var = jnp.maximum(stats[1] / n - mean * mean, 0.0)
    s = gamma * lax.rsqrt(var + BN_EPS)
    t = beta - mean * s
    return s, t


def cgan_forward(x, noise, params):
    """validity = Discriminator(Generator(cat(x, noise))).  x:(B,I), noise:(B,Z)."""
    B = x.shape[0]
    in_dim = x.shape[1] + noise.shape[1]
    out_dim = params["g_w4"].shape[1]
    # Kernel pads the non-hidden dims to one 128-lane tile.
    assert in_dim <= HID and out_dim <= HID, "pad-to-128 path requires dims <= 128"

    tile_b = min(TILE_B_PREF, _round_up(B, 8))
    b_pad = _round_up(B, tile_b)
    n_tiles = b_pad // tile_b
    nvalid = B if b_pad != B else None   # mask padded rows out of BN stats only if needed

    f32 = jnp.float32

    def pad_w(w):  # zero-pad a weight matrix to (HID, HID)
        return jnp.pad(w.astype(f32), ((0, HID - w.shape[0]), (0, HID - w.shape[1])))

    def pad_v(v):  # zero-pad a bias/affine vector to (HID,)
        return jnp.pad(v.astype(f32), (0, HID - v.shape[0]))

    def pack_vecs(*vs):  # pack per-feature vectors into one (8, HID) VMEM resident
        m = jnp.zeros((8, HID), f32)
        for r, v in enumerate(vs):
            m = m.at[r, :].set(pad_v(v))
        return m

    # concat(x, noise), pad features to 128 lanes and batch to the tile grid
    xz = jnp.concatenate([x.astype(f32), noise.astype(f32)], axis=1)
    xz = jnp.pad(xz, ((0, b_pad - B), (0, HID - in_dim)))

    # ---- segment 1: Linear_g1 + ReLU, accumulate BN1 stats ----------------
    a1, st1 = _run_stats_seg(_seg_linear_kernel, nvalid, xz,
                             pad_w(params["g_w1"]), pack_vecs(params["g_b1"]),
                             tile_b, n_tiles)
    s1, t1 = _bn_fold(st1, B, params["g_gamma1"], params["g_beta1"])
    w2f = params["g_w2"] * s1[:, None]
    b2f = params["g_b2"] + t1 @ params["g_w2"]

    # ---- segment 2: (BN1-folded Linear_g2) + ReLU, accumulate BN2 stats ---
    a2, st2 = _run_stats_seg(_seg_linear_kernel, nvalid, a1,
                             w2f, pack_vecs(b2f), tile_b, n_tiles)
    s2, t2 = _bn_fold(st2, B, params["g_gamma2"], params["g_beta2"])
    w3f = params["g_w3"] * s2[:, None]
    b3f = params["g_b3"] + t2 @ params["g_w3"]

    # ---- segment 3: (BN2-folded Lin_g3+ReLU) -> Lin_g4 -> Lin_d1+ReLU,
    #                 accumulate discriminator-BN stats ---------------------
    w_stack3 = jnp.stack([w3f, pad_w(params["g_w4"]), pad_w(params["d_w1"])])
    v_pack3 = pack_vecs(b3f, params["g_b4"], params["d_b1"])
    a3, st3 = _run_stats_seg(_seg_gen_tail_kernel, nvalid, a2,
                             w_stack3, v_pack3, tile_b, n_tiles)
    s3, t3 = _bn_fold(st3, B, params["d_gamma1"], params["d_beta1"])
    wd2f = params["d_w2"] * s3[:, None]
    bd2f = params["d_b2"] + t3 @ params["d_w2"]

    # ---- segment 4: (BN_d-folded Lin_d2+ReLU) -> adv Linear + Sigmoid -----
    w_stack4 = jnp.stack([wd2f, pad_w(params["d_w3"])])
    v_pack4 = pack_vecs(bd2f, params["d_b3"])
    validity = _run_final_seg(a3, w_stack4, v_pack4, tile_b, n_tiles)

    # lane-dense (B_pad, 128) slab -> real (B, 1) output
    return validity[:B, 0:1]


# --------------------------------------------------------------------------
# Parameters (shapes match the PyTorch module; weights stored (in, out))
# --------------------------------------------------------------------------
def init_params(key, input_size, output_size, noise_dim=3):
    ks = jax.random.split(key, 14)

    def linear(kw, kb, fan_in, fan_out):
        bound = 1.0 / (fan_in ** 0.5)
        w = jax.random.uniform(kw, (fan_in, fan_out), jnp.float32, -bound, bound)
        b = jax.random.uniform(kb, (fan_out,), jnp.float32, -bound, bound)
        return w, b

    g_w1, g_b1 = linear(ks[0], ks[1], input_size + noise_dim, HID)
    g_w2, g_b2 = linear(ks[2], ks[3], HID, HID)
    g_w3, g_b3 = linear(ks[4], ks[5], HID, HID)
    g_w4, g_b4 = linear(ks[6], ks[7], HID, output_size)
    d_w1, d_b1 = linear(ks[8], ks[9], output_size, HID)
    d_w2, d_b2 = linear(ks[10], ks[11], HID, HID)
    d_w3, d_b3 = linear(ks[12], ks[13], HID, 1)

    ones, zeros = jnp.ones((HID,), jnp.float32), jnp.zeros((HID,), jnp.float32)
    return dict(
        g_w1=g_w1, g_b1=g_b1, g_gamma1=ones, g_beta1=zeros,
        g_w2=g_w2, g_b2=g_b2, g_gamma2=ones, g_beta2=zeros,
        g_w3=g_w3, g_b3=g_b3,
        g_w4=g_w4, g_b4=g_b4,
        d_w1=d_w1, d_b1=d_b1, d_gamma1=ones, d_beta1=zeros,
        d_w2=d_w2, d_b2=d_b2,
        d_w3=d_w3, d_b3=d_b3,
    )


def _reference(x, noise, p):
    """Pure-JAX reference of the same cGAN forward (training-mode BN)."""
    def bn(h, g, b):
        m = h.mean(0, keepdims=True)
        v = ((h - m) ** 2).mean(0, keepdims=True)
        return (h - m) / jnp.sqrt(v + BN_EPS) * g + b

    h = jnp.concatenate([x, noise], axis=1)
    h = jnp.maximum(h @ p["g_w1"] + p["g_b1"], 0.0)
    h = bn(h, p["g_gamma1"], p["g_beta1"])
    h = jnp.maximum(h @ p["g_w2"] + p["g_b2"], 0.0)
    h = bn(h, p["g_gamma2"], p["g_beta2"])
    h = jnp.maximum(h @ p["g_w3"] + p["g_b3"], 0.0)
    y = h @ p["g_w4"] + p["g_b4"]
    hd = jnp.maximum(y @ p["d_w1"] + p["d_b1"], 0.0)
    hd = bn(hd, p["d_gamma1"], p["d_beta1"])
    hd = jnp.maximum(hd @ p["d_w2"] + p["d_b2"], 0.0)
    return jax.nn.sigmoid(hd @ p["d_w3"] + p["d_b3"])


if __name__ == "__main__":
    key = jax.random.PRNGKey(0)
    k_x, k_z, k_p = jax.random.split(key, 3)

    batch, input_size, output_size, noise_dim = 8, 16, 16, 3
    x = jax.random.normal(k_x, (batch, input_size), jnp.float32)
    # TODO(synk): cGAN.sample_noise uses host-side numpy RNG; here noise is a plain input.
    noise = jax.random.normal(k_z, (batch, noise_dim), jnp.float32)
    params = init_params(k_p, input_size, output_size, noise_dim)

    out = jax.jit(cgan_forward)(x, noise, params)
    out = jax.block_until_ready(out)

    ref = _reference(x, noise, params)
    assert out.shape == (batch, 1)
    assert jnp.allclose(out, ref, atol=1e-3, rtol=1e-3), float(jnp.max(jnp.abs(out - ref)))

    print("KERNEL_OK")
</pallas_src>

<mosaic_0001>
module attributes {stable_mosaic.version = 11 : i64} {
  func.func @_seg_linear_kernel(%arg0: i32, %arg1: memref<8x128xf32, #tpu.memory_space<vmem>>, %arg2: memref<128x128xf32, #tpu.memory_space<vmem>>, %arg3: memref<8x128xf32, #tpu.memory_space<vmem>>, %arg4: memref<8x128xf32, #tpu.memory_space<vmem>>, %arg5: memref<8x128xf32, #tpu.memory_space<vmem>>) attributes {dimension_semantics = [#tpu.dimension_semantics<arbitrary>], iteration_bounds = array<i64: 1>, scalar_prefetch = 0 : i64, scratch_operands = 0 : i64, tpu.core_type = #tpu.core_type<tc>, window_params = [{transform_indices = @transform_0, window_bounds = array<i64: 8, 128>}, {pipeline_mode = #tpu.pipeline_mode<synchronous>, transform_indices = @transform_1, window_bounds = array<i64: 128, 128>}, {pipeline_mode = #tpu.pipeline_mode<synchronous>, transform_indices = @transform_2, window_bounds = array<i64: 8, 128>}, {transform_indices = @transform_3, window_bounds = array<i64: 8, 128>}, {pipeline_mode = #tpu.pipeline_mode<synchronous>, transform_indices = @transform_4, window_bounds = array<i64: 8, 128>}]} {
    %c0_i32 = arith.constant 0 : i32
    %0 = arith.cmpi eq, %arg0, %c0_i32 : i32
    %1 = arith.extui %0 : i1 to i32
    %c0_i32_0 = arith.constant 0 : i32
    %2 = arith.cmpi ne, %1, %c0_i32_0 : i32
    scf.if %2 {
      %cst_18 = arith.constant 0.000000e+00 : f32
      %23 = vector.broadcast %cst_18 : f32 to vector<8x128xf32>
      %c0_19 = arith.constant 0 : index
      %c0_20 = arith.constant 0 : index
      %24 = vector.load %arg5[%c0_19, %c0_20] : memref<8x128xf32, #tpu.memory_space<vmem>>, vector<8x128xf32>
      tpu.vector_store %arg5[%c0_19, %c0_20], %23 {strides = array<i32>} : memref<8x128xf32, #tpu.memory_space<vmem>>, vector<8x128xf32>,
    } else {
    }
    %c0 = arith.constant 0 : index
    %c0_1 = arith.constant 0 : index
    %3 = vector.load %arg1[%c0, %c0_1] : memref<8x128xf32, #tpu.memory_space<vmem>>, vector<8x128xf32>
    %c0_2 = arith.constant 0 : index
    %c0_3 = arith.constant 0 : index
    %4 = vector.load %arg2[%c0_2, %c0_3] : memref<128x128xf32, #tpu.memory_space<vmem>>, vector<128x128xf32>
    %cst = arith.constant dense<0.000000e+00> : vector<8x128xf32>
    %5 = tpu.matmul %3, %4, %cst {dimension_numbers = #tpu.dot_dimension_numbers<[1], [0], [0], [1], [0, 0, 1, 1], [], []>} : vector<8x128xf32>, vector<128x128xf32>, vector<8x128xf32> -> vector<8x128xf32>
    %c0_4 = arith.constant 0 : index
    %c0_5 = arith.constant 0 : index
    %6 = vector.load %arg3[%c0_4, %c0_5] : memref<8x128xf32, #tpu.memory_space<vmem>>, vector<1x128xf32>
    %7 = vector.broadcast %6 : vector<1x128xf32> to vector<8x128xf32>
    %8 = arith.addf %5, %7 : vector<8x128xf32>
    %cst_6 = arith.constant 0.000000e+00 : f32
    %9 = vector.broadcast %cst_6 : f32 to vector<8x128xf32>
    %10 = arith.maximumf %8, %9 : vector<8x128xf32>
    %c0_7 = arith.constant 0 : index
    %c0_8 = arith.constant 0 : index
    %11 = vector.load %arg4[%c0_7, %c0_8] : memref<8x128xf32, #tpu.memory_space<vmem>>, vector<8x128xf32>
    tpu.vector_store %arg4[%c0_7, %c0_8], %10 {strides = array<i32>} : memref<8x128xf32, #tpu.memory_space<vmem>>, vector<8x128xf32>,
    %c0_9 = arith.constant 0 : index
    %c0_10 = arith.constant 0 : index
    %12 = vector.load %arg5[%c0_9, %c0_10] : memref<8x128xf32, #tpu.memory_space<vmem>>, vector<1x128xf32>
    %cst_11 = arith.constant dense<0.000000e+00> : vector<128xf32>
    %13 = vector.multi_reduction <add>, %10, %cst_11 [0] : vector<8x128xf32> to vector<128xf32>
    %14 = vector.shape_cast %13 : vector<128xf32> to vector<1x128xf32>
    %15 = arith.addf %12, %14 : vector<1x128xf32>
    %c0_12 = arith.constant 0 : index
    %c0_13 = arith.constant 0 : index
    %16 = vector.load %arg5[%c0_12, %c0_13] : memref<8x128xf32, #tpu.memory_space<vmem>>, vector<1x128xf32>
    tpu.vector_store %arg5[%c0_12, %c0_13], %15 {strides = array<i32>} : memref<8x128xf32, #tpu.memory_space<vmem>>, vector<1x128xf32>,
    %c1 = arith.constant 1 : index
    %c0_14 = arith.constant 0 : index
    %17 = vector.load %arg5[%c1, %c0_14] : memref<8x128xf32, #tpu.memory_space<vmem>>, vector<1x128xf32>
    %18 = arith.mulf %10, %10 : vector<8x128xf32>
    %cst_15 = arith.constant dense<0.000000e+00> : vector<128xf32>
    %19 = vector.multi_reduction <add>, %18, %cst_15 [0] : vector<8x128xf32> to vector<128xf32>
    %20 = vector.shape_cast %19 : vector<128xf32> to vector<1x128xf32>
    %21 = arith.addf %17, %20 : vector<1x128xf32>
    %c1_16 = arith.constant 1 : index
    %c0_17 = arith.constant 0 : index
    %22 = vector.load %arg5[%c1_16, %c0_17] : memref<8x128xf32, #tpu.memory_space<vmem>>, vector<1x128xf32>
    tpu.vector_store %arg5[%c1_16, %c0_17], %21 {strides = array<i32>} : memref<8x128xf32, #tpu.memory_space<vmem>>, vector<1x128xf32>,
    return
  }
  func.func @transform_0(%arg0: i32) -> (i32, i32) {
    %c0_i32 = arith.constant 0 : i32
    %c0_i32_0 = arith.constant 0 : i32
    return %arg0, %c0_i32 : i32, i32
  }
  func.func @transform_1(%arg0: i32) -> (i32, i32) {
    %c0_i32 = arith.constant 0 : i32
    %c0_i32_0 = arith.constant 0 : i32
    %c0_i32_1 = arith.constant 0 : i32
    return %c0_i32, %c0_i32_0 : i32, i32
  }
  func.func @transform_2(%arg0: i32) -> (i32, i32) {
    %c0_i32 = arith.constant 0 : i32
    %c0_i32_0 = arith.constant 0 : i32
    %c0_i32_1 = arith.constant 0 : i32
    return %c0_i32, %c0_i32_0 : i32, i32
  }
  func.func @transform_3(%arg0: i32) -> (i32, i32) {
    %c0_i32 = arith.constant 0 : i32
    %c0_i32_0 = arith.constant 0 : i32
    return %arg0, %c0_i32 : i32, i32
  }
  func.func @transform_4(%arg0: i32) -> (i32, i32) {
    %c0_i32 = arith.constant 0 : i32
    %c0_i32_0 = arith.constant 0 : i32
    %c0_i32_1 = arith.constant 0 : i32
    return %c0_i32, %c0_i32_0 : i32, i32
  }
}

module attributes {stable_mosaic.version = 11 : i64} {
  func.func @_seg_gen_tail_kernel(%arg0: i32, %arg1: memref<8x128xf32, #tpu.memory_space<vmem>>, %arg2: memref<3x128x128xf32, #tpu.memory_space<vmem>>, %arg3: memref<8x128xf32, #tpu.memory_space<vmem>>, %arg4: memref<8x128xf32, #tpu.memory_space<vmem>>, %arg5: memref<8x128xf32, #tpu.memory_space<vmem>>) attributes {dimension_semantics = [#tpu.dimension_semantics<arbitrary>], iteration_bounds = array<i64: 1>, scalar_prefetch = 0 : i64, scratch_operands = 0 : i64, tpu.core_type = #tpu.core_type<tc>, window_params = [{transform_indices = @transform_0, window_bounds = array<i64: 8, 128>}, {pipeline_mode = #tpu.pipeline_mode<synchronous>, transform_indices = @transform_1, window_bounds = array<i64: 3, 128, 128>}, {pipeline_mode = #tpu.pipeline_mode<synchronous>, transform_indices = @transform_2, window_bounds = array<i64: 8, 128>}, {transform_indices = @transform_3, window_bounds = array<i64: 8, 128>}, {pipeline_mode = #tpu.pipeline_mode<synchronous>, transform_indices = @transform_4, window_bounds = array<i64: 8, 128>}]} {
    %c0_i32 = arith.constant 0 : i32
    %0 = arith.cmpi eq, %arg0, %c0_i32 : i32
    %1 = arith.extui %0 : i1 to i32
    %c0_i32_0 = arith.constant 0 : i32
    %2 = arith.cmpi ne, %1, %c0_i32_0 : i32
    scf.if %2 {
      %cst_31 = arith.constant 0.000000e+00 : f32
      %38 = vector.broadcast %cst_31 : f32 to vector<8x128xf32>
      %c0_32 = arith.constant 0 : index
      %c0_33 = arith.constant 0 : index
      %39 = vector.load %arg5[%c0_32, %c0_33] : memref<8x128xf32, #tpu.memory_space<vmem>>, vector<8x128xf32>
      tpu.vector_store %arg5[%c0_32, %c0_33], %38 {strides = array<i32>} : memref<8x128xf32, #tpu.memory_space<vmem>>, vector<8x128xf32>,
    } else {
    }
    %c0 = arith.constant 0 : index
    %c0_1 = arith.constant 0 : index
    %3 = vector.load %arg1[%c0, %c0_1] : memref<8x128xf32, #tpu.memory_space<vmem>>, vector<8x128xf32>
    %c0_2 = arith.constant 0 : index
    %c0_3 = arith.constant 0 : index
    %c0_4 = arith.constant 0 : index
    %4 = vector.load %arg2[%c0_2, %c0_3, %c0_4] : memref<3x128x128xf32, #tpu.memory_space<vmem>>, vector<1x128x128xf32>
    %5 = vector.shape_cast %4 : vector<1x128x128xf32> to vector<128x128xf32>
    %cst = arith.constant dense<0.000000e+00> : vector<8x128xf32>
    %6 = tpu.matmul %3, %5, %cst {dimension_numbers = #tpu.dot_dimension_numbers<[1], [0], [0], [1], [0, 0, 1, 1], [], []>} : vector<8x128xf32>, vector<128x128xf32>, vector<8x128xf32> -> vector<8x128xf32>
    %c0_5 = arith.constant 0 : index
    %c0_6 = arith.constant 0 : index
    %7 = vector.load %arg3[%c0_5, %c0_6] : memref<8x128xf32, #tpu.memory_space<vmem>>, vector<1x128xf32>
    %8 = vector.broadcast %7 : vector<1x128xf32> to vector<8x128xf32>
    %9 = arith.addf %6, %8 : vector<8x128xf32>
    %cst_7 = arith.constant 0.000000e+00 : f32
    %10 = vector.broadcast %cst_7 : f32 to vector<8x128xf32>
    %11 = arith.maximumf %9, %10 : vector<8x128xf32>
    %c1 = arith.constant 1 : index
    %c0_8 = arith.constant 0 : index
    %c0_9 = arith.constant 0 : index
    %12 = vector.load %arg2[%c1, %c0_8, %c0_9] : memref<3x128x128xf32, #tpu.memory_space<vmem>>, vector<1x128x128xf32>
    %13 = vector.shape_cast %12 : vector<1x128x128xf32> to vector<128x128xf32>
    %cst_10 = arith.constant dense<0.000000e+00> : vector<8x128xf32>
    %14 = tpu.matmul %11, %13, %cst_10 {dimension_numbers = #tpu.dot_dimension_numbers<[1], [0], [0], [1], [0, 0, 1, 1], [], []>} : vector<8x128xf32>, vector<128x128xf32>, vector<8x128xf32> -> vector<8x128xf32>
    %c1_11 = arith.constant 1 : index
    %c0_12 = arith.constant 0 : index
    %15 = vector.load %arg3[%c1_11, %c0_12] : memref<8x128xf32, #tpu.memory_space<vmem>>, vector<1x128xf32>
    %16 = vector.broadcast %15 : vector<1x128xf32> to vector<8x128xf32>
    %17 = arith.addf %14, %16 : vector<8x128xf32>
    %c2 = arith.constant 2 : index
    %c0_13 = arith.constant 0 : index
    %c0_14 = arith.constant 0 : index
    %18 = vector.load %arg2[%c2, %c0_13, %c0_14] : memref<3x128x128xf32, #tpu.memory_space<vmem>>, vector<1x128x128xf32>
    %19 = vector.shape_cast %18 : vector<1x128x128xf32> to vector<128x128xf32>
    %cst_15 = arith.constant dense<0.000000e+00> : vector<8x128xf32>
    %20 = tpu.matmul %17, %19, %cst_15 {dimension_numbers = #tpu.dot_dimension_numbers<[1], [0], [0], [1], [0, 0, 1, 1], [], []>} : vector<8x128xf32>, vector<128x128xf32>, vector<8x128xf32> -> vector<8x128xf32>
    %c2_16 = arith.constant 2 : index
    %c0_17 = arith.constant 0 : index
    %21 = vector.load %arg3[%c2_16, %c0_17] : memref<8x128xf32, #tpu.memory_space<vmem>>, vector<1x128xf32>
    %22 = vector.broadcast %21 : vector<1x128xf32> to vector<8x128xf32>
    %23 = arith.addf %20, %22 : vector<8x128xf32>
    %cst_18 = arith.constant 0.000000e+00 : f32
    %24 = vector.broadcast %cst_18 : f32 to vector<8x128xf32>
    %25 = arith.maximumf %23, %24 : vector<8x128xf32>
    %c0_19 = arith.constant 0 : index
    %c0_20 = arith.constant 0 : index
    %26 = vector.load %arg4[%c0_19, %c0_20] : memref<8x128xf32, #tpu.memory_space<vmem>>, vector<8x128xf32>
    tpu.vector_store %arg4[%c0_19, %c0_20], %25 {strides = array<i32>} : memref<8x128xf32, #tpu.memory_space<vmem>>, vector<8x128xf32>,
    %c0_21 = arith.constant 0 : index
    %c0_22 = arith.constant 0 : index
    %27 = vector.load %arg5[%c0_21, %c0_22] : memref<8x128xf32, #tpu.memory_space<vmem>>, vector<1x128xf32>
    %cst_23 = arith.constant dense<0.000000e+00> : vector<128xf32>
    %28 = vector.multi_reduction <add>, %25, %cst_23 [0] : vector<8x128xf32> to vector<128xf32>
    %29 = vector.shape_cast %28 : vector<128xf32> to vector<1x128xf32>
    %30 = arith.addf %27, %29 : vector<1x128xf32>
    %c0_24 = arith.constant 0 : index
    %c0_25 = arith.constant 0 : index
    %31 = vector.load %arg5[%c0_24, %c0_25] : memref<8x128xf32, #tpu.memory_space<vmem>>, vector<1x128xf32>
    tpu.vector_store %arg5[%c0_24, %c0_25], %30 {strides = array<i32>} : memref<8x128xf32, #tpu.memory_space<vmem>>, vector<1x128xf32>,
    %c1_26 = arith.constant 1 : index
    %c0_27 = arith.constant 0 : index
    %32 = vector.load %arg5[%c1_26, %c0_27] : memref<8x128xf32, #tpu.memory_space<vmem>>, vector<1x128xf32>
    %33 = arith.mulf %25, %25 : vector<8x128xf32>
    %cst_28 = arith.constant dense<0.000000e+00> : vector<128xf32>
    %34 = vector.multi_reduction <add>, %33, %cst_28 [0] : vector<8x128xf32> to vector<128xf32>
    %35 = vector.shape_cast %34 : vector<128xf32> to vector<1x128xf32>
    %36 = arith.addf %32, %35 : vector<1x128xf32>
    %c1_29 = arith.constant 1 : index
    %c0_30 = arith.constant 0 : index
    %37 = vector.load %arg5[%c1_29, %c0_30] : memref<8x128xf32, #tpu.memory_space<vmem>>, vector<1x128xf32>
    tpu.vector_store %arg5[%c1_29, %c0_30], %36 {strides = array<i32>} : memref<8x128xf32, #tpu.memory_space<vmem>>, vector<1x128xf32>,
    return
  }
  func.func @transform_0(%arg0: i32) -> (i32, i32) {
    %c0_i32 = arith.constant 0 : i32
    %c0_i32_0 = arith.constant 0 : i32
    return %arg0, %c0_i32 : i32, i32
  }
  func.func @transform_1(%arg0: i32) -> (i32, i32, i32) {
    %c0_i32 = arith.constant 0 : i32
    %c0_i32_0 = arith.constant 0 : i32
    %c0_i32_1 = arith.constant 0 : i32
    %c0_i32_2 = arith.constant 0 : i32
    return %c0_i32, %c0_i32_0, %c0_i32_1 : i32, i32, i32
  }
  func.func @transform_2(%arg0: i32) -> (i32, i32) {
    %c0_i32 = arith.constant 0 : i32
    %c0_i32_0 = arith.constant 0 : i32
    %c0_i32_1 = arith.constant 0 : i32
    return %c0_i32, %c0_i32_0 : i32, i32
  }
  func.func @transform_3(%arg0: i32) -> (i32, i32) {
    %c0_i32 = arith.constant 0 : i32
    %c0_i32_0 = arith.constant 0 : i32
    return %arg0, %c0_i32 : i32, i32
  }
  func.func @transform_4(%arg0: i32) -> (i32, i32) {
    %c0_i32 = arith.constant 0 : i32
    %c0_i32_0 = arith.constant 0 : i32
    %c0_i32_1 = arith.constant 0 : i32
    return %c0_i32, %c0_i32_0 : i32, i32
  }
}

module attributes {stable_mosaic.version = 11 : i64} {
  func.func @_seg_disc_tail_kernel(%arg0: i32, %arg1: memref<8x128xf32, #tpu.memory_space<vmem>>, %arg2: memref<2x128x128xf32, #tpu.memory_space<vmem>>, %arg3: memref<8x128xf32, #tpu.memory_space<vmem>>, %arg4: memref<8x128xf32, #tpu.memory_space<vmem>>) attributes {dimension_semantics = [#tpu.dimension_semantics<parallel>], iteration_bounds = array<i64: 1>, scalar_prefetch = 0 : i64, scratch_operands = 0 : i64, tpu.core_type = #tpu.core_type<tc>, window_params = [{transform_indices = @transform_0, window_bounds = array<i64: 8, 128>}, {pipeline_mode = #tpu.pipeline_mode<synchronous>, transform_indices = @transform_1, window_bounds = array<i64: 2, 128, 128>}, {pipeline_mode = #tpu.pipeline_mode<synchronous>, transform_indices = @transform_2, window_bounds = array<i64: 8, 128>}, {transform_indices = @transform_3, window_bounds = array<i64: 8, 128>}]} {
    %c0 = arith.constant 0 : index
    %c0_0 = arith.constant 0 : index
    %0 = vector.load %arg1[%c0, %c0_0] : memref<8x128xf32, #tpu.memory_space<vmem>>, vector<8x128xf32>
    %c0_1 = arith.constant 0 : index
    %c0_2 = arith.constant 0 : index
    %c0_3 = arith.constant 0 : index
    %1 = vector.load %arg2[%c0_1, %c0_2, %c0_3] : memref<2x128x128xf32, #tpu.memory_space<vmem>>, vector<1x128x128xf32>
    %2 = vector.shape_cast %1 : vector<1x128x128xf32> to vector<128x128xf32>
    %cst = arith.constant dense<0.000000e+00> : vector<8x128xf32>
    %3 = tpu.matmul %0, %2, %cst {dimension_numbers = #tpu.dot_dimension_numbers<[1], [0], [0], [1], [0, 0, 1, 1], [], []>} : vector<8x128xf32>, vector<128x128xf32>, vector<8x128xf32> -> vector<8x128xf32>
    %c0_4 = arith.constant 0 : index
    %c0_5 = arith.constant 0 : index
    %4 = vector.load %arg3[%c0_4, %c0_5] : memref<8x128xf32, #tpu.memory_space<vmem>>, vector<1x128xf32>
    %5 = vector.broadcast %4 : vector<1x128xf32> to vector<8x128xf32>
    %6 = arith.addf %3, %5 : vector<8x128xf32>
    %cst_6 = arith.constant 0.000000e+00 : f32
    %7 = vector.broadcast %cst_6 : f32 to vector<8x128xf32>
    %8 = arith.maximumf %6, %7 : vector<8x128xf32>
    %c1 = arith.constant 1 : index
    %c0_7 = arith.constant 0 : index
    %c0_8 = arith.constant 0 : index
    %9 = vector.load %arg2[%c1, %c0_7, %c0_8] : memref<2x128x128xf32, #tpu.memory_space<vmem>>, vector<1x128x128xf32>
    %10 = vector.shape_cast %9 : vector<1x128x128xf32> to vector<128x128xf32>
    %cst_9 = arith.constant dense<0.000000e+00> : vector<8x128xf32>
    %11 = tpu.matmul %8, %10, %cst_9 {dimension_numbers = #tpu.dot_dimension_numbers<[1], [0], [0], [1], [0, 0, 1, 1], [], []>} : vector<8x128xf32>, vector<128x128xf32>, vector<8x128xf32> -> vector<8x128xf32>
    %c1_10 = arith.constant 1 : index
    %c0_11 = arith.constant 0 : index
    %12 = vector.load %arg3[%c1_10, %c0_11] : memref<8x128xf32, #tpu.memory_space<vmem>>, vector<1x128xf32>
    %13 = vector.broadcast %12 : vector<1x128xf32> to vector<8x128xf32>
    %14 = arith.addf %11, %13 : vector<8x128xf32>
    %15 = arith.negf %14 : vector<8x128xf32>
    %16 = math.exp %15 : vector<8x128xf32>
    %cst_12 = arith.constant 1.000000e+00 : f32
    %17 = vector.broadcast %cst_12 : f32 to vector<8x128xf32>
    %18 = arith.addf %17, %16 : vector<8x128xf32>
    %19 = arith.divf %17, %18 : vector<8x128xf32>
    %c0_13 = arith.constant 0 : index
    %c0_14 = arith.constant 0 : index
    %20 = vector.load %arg4[%c0_13, %c0_14] : memref<8x128xf32, #tpu.memory_space<vmem>>, vector<8x128xf32>
    tpu.vector_store %arg4[%c0_13, %c0_14], %19 {strides = array<i32>} : memref<8x128xf32, #tpu.memory_space<vmem>>, vector<8x128xf32>,
    return
  }
  func.func @transform_0(%arg0: i32) -> (i32, i32) {
    %c0_i32 = arith.constant 0 : i32
    %c0_i32_0 = arith.constant 0 : i32
    return %arg0, %c0_i32 : i32, i32
  }
  func.func @transform_1(%arg0: i32) -> (i32, i32, i32) {
    %c0_i32 = arith.constant 0 : i32
    %c0_i32_0 = arith.constant 0 : i32
    %c0_i32_1 = arith.constant 0 : i32
    %c0_i32_2 = arith.constant 0 : i32
    return %c0_i32, %c0_i32_0, %c0_i32_1 : i32, i32, i32
  }
  func.func @transform_2(%arg0: i32) -> (i32, i32) {
    %c0_i32 = arith.constant 0 : i32
    %c0_i32_0 = arith.constant 0 : i32
    %c0_i32_1 = arith.constant 0 : i32
    return %c0_i32, %c0_i32_0 : i32, i32
  }
  func.func @transform_3(%arg0: i32) -> (i32, i32) {
    %c0_i32 = arith.constant 0 : i32
    %c0_i32_0 = arith.constant 0 : i32
    return %arg0, %c0_i32 : i32, i32
  }
}

</mosaic_0001>

<bundles_post_ra>
// kernel: cgan_forward.4
= control target key start
LH: loop header
LB: loop body
LE: loop exit
PB: predicated region body
PF: predicated region fallthrough
CT: control target
= control target key end

     0   :  { %v222_v0 = vmov 0.0|0.0   ;;  %v223_v4 = vmov 0.0   ;;  %vm224_vm0 = vmmov 0   ;;  %s322_s1 = inlined_call_operand.vmem [shape: f32[128,128], index: 1, kind: input, shape index: {}]   ;;  %s323_s4 = inlined_call_operand.vmem [shape: f32[8,128], index: 4, kind: output, shape index: {1}]   ;;  %s324_s0 = inlined_call_operand.vmem [shape: f32[8,128], index: 0, kind: input, shape index: {}]   ;;  %s325_s2 = inlined_call_operand.vmem [shape: f32[8,128], index: 2, kind: input, shape index: {}]   ;;  %s326_s3 = inlined_call_operand.vmem [shape: f32[8,128], index: 3, kind: output, shape index: {0}]  }
   0x1   :  { %195 = vmatprep.subr.bf16.mxu0 %v222_v0  ;;  %v22_v1 = vld [vmem:[%s322_s1] sm:$0xff]  ;;  %v23_v2 = vld [vmem:[%s322_s1 + $0x8] sm:$0xff]  ;;  %v24_v3 = vld [vmem:[%s322_s1 + $0x10] sm:$0xff]  ;;  %20 = vst [vmem:[%s323_s4] sm:$0xff] %v223_v4  ;;  %192 = vmatprep.mubr.msk.f32.mxu0 %vm224_vm0, %v223_v4 }
   0x2   :  { %v196_v5 = vpack.c.bf16 %v23_v2, %v22_v1  ;;  %v25_v6 = vld [vmem:[%s322_s1 + $0x18] sm:$0xff]  ;;  %v26_v8 = vld [vmem:[%s322_s1 + $0x20] sm:$0xff]  ;;  %v27_v9 = vld [vmem:[%s322_s1 + $0x28] sm:$0xff] }
   0x3   :  { %v199_v7 = vpack.c.bf16 %v25_v6, %v24_v3  ;;  %v202_v10 = vpack.c.bf16 %v27_v9, %v26_v8  ;;  %v28_v11 = vld [vmem:[%s322_s1 + $0x30] sm:$0xff]  ;;  %v29_v12 = vld [vmem:[%s322_s1 + $0x38] sm:$0xff]  ;;  %v30_v14 = vld [vmem:[%s322_s1 + $0x40] sm:$0xff] }
   0x4   :  { %197 = vmatpush3.bf16.msra.mxu0 %v196_v5  ;;  %v205_v13 = vpack.c.bf16 %v29_v12, %v28_v11  ;;  %v31_v15 = vld [vmem:[%s322_s1 + $0x48] sm:$0xff]  ;;  %v32_v17 = vld [vmem:[%s322_s1 + $0x50] sm:$0xff]  ;;  %v33_v18 = vld [vmem:[%s322_s1 + $0x58] sm:$0xff] }
   0x5   :  { %198 = vmatprep.subr.bf16.mxu0 %v222_v0  ;;  %v208_v16 = vpack.c.bf16 %v31_v15, %v30_v14  ;;  %v211_v19 = vpack.c.bf16 %v33_v18, %v32_v17  ;;  %v34_v20 = vld [vmem:[%s322_s1 + $0x60] sm:$0xff]  ;;  %v35_v21 = vld [vmem:[%s322_s1 + $0x68] sm:$0xff]  ;;  %v36_v23 = vld [vmem:[%s322_s1 + $0x70] sm:$0xff] }
   0x6   :  { %v214_v22 = vpack.c.bf16 %v35_v21, %v34_v20  ;;  %v37_v24 = vld [vmem:[%s322_s1 + $0x78] sm:$0xff]  ;;  %v21_v26 = vld [vmem:[%s324_s0] sm:$0xff] }
   0x7   :  { %v217_v25 = vpack.c.bf16 %v37_v24, %v36_v23  ;;  %v142_v27 = vld [vmem:[%s325_s2] ss:$0 sm:$0xff] }
   0x8   :  { %200 = vmatpush3.bf16.msra.mxu0 %v199_v7  ;;  %v115_v42 = vld [vmem:[%s323_s4] sm:$0x1]  ;;  %v124_v45 = vld [vmem:[%s323_s4 + $0x1] sm:$0x1] }
   0x9   :  { %201 = vmatprep.subr.bf16.mxu0 %v222_v0 }
   0xc   :  { %203 = vmatpush3.bf16.msra.mxu0 %v202_v10 }
   0xd   :  { %204 = vmatprep.subr.bf16.mxu0 %v222_v0 }
  0x10   :  { %206 = vmatpush3.bf16.msra.mxu0 %v205_v13 }
  0x11   :  { %207 = vmatprep.subr.bf16.mxu0 %v222_v0 }
  0x14   :  { %209 = vmatpush3.bf16.msra.mxu0 %v208_v16 }
  0x15   :  { %210 = vmatprep.subr.bf16.mxu0 %v222_v0 }
  0x18   :  { %212 = vmatpush3.bf16.msra.mxu0 %v211_v19 }
  0x19   :  { %213 = vmatprep.subr.bf16.mxu0 %v222_v0 }
  0x1c   :  { %215 = vmatpush3.bf16.msra.mxu0 %v214_v22 }
  0x1d   :  { %216 = vmatprep.subr.bf16.mxu0 %v222_v0 }
  0x20   :  { %218 = vmatpush3.bf16.msra.mxu0 %v217_v25 }
  0x23   :  { %193 = vmatmul.mubr.f32.vlgmr.msra.gmra.mrb[0].mxu0 %v21_v26 }
  0xf6   :  { %v109_v28 = vpop.f32.mrb[0].mxu0 }
  0xf7   :  { %v110_v29 = vadd.f32 %v142_v27, %v109_v28  ;;  %v194_v30 = vpop.f32.mrb[1].mxu0 }
  0xf9   :  { %v113_v31 = vmax.f32 %v110_v29, 0.0 }
  0xfb   :  { %114 = vst [vmem:[%s326_s3] sm:$0xff] %v113_v31  ;;  %v116_v32 = vrot.slane %v113_v31, 4  ;;  %v125_v33 = vmul.f32 %v113_v31, %v113_v31 }
  0xfd   :  { %v117_v34 = vadd.f32 %v116_v32, %v113_v31  ;;  %v126_v35 = vrot.slane %v125_v33, 4 }
  0xff   :  { %v118_v36 = vrot.slane %v117_v34, 2  ;;  %v127_v37 = vadd.f32 %v126_v35, %v125_v33 }
 0x101   :  { %v119_v38 = vadd.f32 %v118_v36, %v117_v34  ;;  %v128_v39 = vrot.slane %v127_v37, 2 }
 0x103   :  { %v120_v40 = vrot.slane %v119_v38, 1  ;;  %v129_v41 = vadd.f32 %v128_v39, %v127_v37 }
 0x105   :  { %v121_v43 = vadd.f32 %v120_v40, %v119_v38  ;;  %v130_v44 = vrot.slane %v129_v41, 1 }
 0x107   :  { %v122_v46 = vadd.f32 %v121_v43, %v115_v42  ;;  %v131_v47 = vadd.f32 %v130_v44, %v129_v41 }
 0x109   :  { %123 = vst [vmem:[%s323_s4] sm:$0x1] %v122_v46  ;;  %v132_v48 = vadd.f32 %v131_v47, %v124_v45 }
 0x10b   :  { %133 = vst [vmem:[%s323_s4 + $0x1] sm:$0x1] %v132_v48 }

// kernel: cgan_forward.7
= control target key start
LH: loop header
LB: loop body
LE: loop exit
PB: predicated region body
PF: predicated region fallthrough
CT: control target
= control target key end

     0   :  { %v388_v0 = vmov 0.0|0.0   ;;  %vm389_vm0 = vmmov 0   ;;  %v390_v4 = vmov 0.0   ;;  %s535_s1 = inlined_call_operand.vmem [shape: f32[2,128,128], index: 1, kind: input, shape index: {}]   ;;  %s536_s0 = inlined_call_operand.vmem [shape: f32[8,128], index: 0, kind: input, shape index: {}]   ;;  %s537_s2 = inlined_call_operand.vmem [shape: f32[8,128], index: 2, kind: input, shape index: {}]   ;;  %s538_s3 = inlined_call_operand.vmem [shape: f32[8,128], index: 3, kind: output, shape index: {}]  }
   0x1   :  { %333 = vmatprep.subr.bf16.mxu0 %v388_v0  ;;  %v15_v1 = vld [vmem:[%s535_s1] sm:$0xff]  ;;  %v16_v2 = vld [vmem:[%s535_s1 + $0x8] sm:$0xff]  ;;  %v17_v3 = vld [vmem:[%s535_s1 + $0x10] sm:$0xff]  ;;  %295 = vmatprep.mubr.msk.f32.mxu0 %vm389_vm0, %v390_v4 }
   0x2   :  { %v334_v5 = vpack.c.bf16 %v16_v2, %v15_v1  ;;  %v18_v6 = vld [vmem:[%s535_s1 + $0x18] sm:$0xff]  ;;  %357 = vmatprep.subr.bf16.mxu1 %v388_v0  ;;  %330 = vmatprep.mubr.msk.f32.mxu1 %vm389_vm0, %v390_v4  ;;  %v19_v8 = vld [vmem:[%s535_s1 + $0x20] sm:$0xff]  ;;  %v20_v9 = vld [vmem:[%s535_s1 + $0x28] sm:$0xff] }
   0x3   :  { %v337_v7 = vpack.c.bf16 %v18_v6, %v17_v3  ;;  %v211_v10 = vld [vmem:[%s535_s1 + $0x80] sm:$0xff]  ;;  %v212_v11 = vld [vmem:[%s535_s1 + $0x88] sm:$0xff]  ;;  %v213_v12 = vld [vmem:[%s535_s1 + $0x90] sm:$0xff]  ;;  %v340_v14 = vpack.c.bf16 %v20_v9, %v19_v8 }
   0x4   :  { %335 = vmatpush3.bf16.msra.mxu0 %v334_v5  ;;  %v214_v13 = vld [vmem:[%s535_s1 + $0x98] sm:$0xff]  ;;  %v358_v15 = vpack.c.bf16 %v212_v11, %v211_v10  ;;  %v21_v16 = vld [vmem:[%s535_s1 + $0x30] sm:$0xff]  ;;  %v215_v19 = vld [vmem:[%s535_s1 + $0xa0] sm:$0xff] }
   0x5   :  { %336 = vmatprep.subr.bf16.mxu0 %v388_v0  ;;  %v22_v17 = vld [vmem:[%s535_s1 + $0x38] sm:$0xff]  ;;  %v361_v18 = vpack.c.bf16 %v214_v13, %v213_v12  ;;  %v216_v20 = vld [vmem:[%s535_s1 + $0xa8] sm:$0xff]  ;;  %v23_v22 = vld [vmem:[%s535_s1 + $0x40] sm:$0xff] }
   0x6   :  { %359 = vmatpush3.bf16.msra.mxu1 %v358_v15  ;;  %v343_v21 = vpack.c.bf16 %v22_v17, %v21_v16  ;;  %v24_v23 = vld [vmem:[%s535_s1 + $0x48] sm:$0xff]  ;;  %v364_v24 = vpack.c.bf16 %v216_v20, %v215_v19  ;;  %v217_v25 = vld [vmem:[%s535_s1 + $0xb0] sm:$0xff]  ;;  %v218_v26 = vld [vmem:[%s535_s1 + $0xb8] sm:$0xff] }
   0x7   :  { %360 = vmatprep.subr.bf16.mxu1 %v388_v0  ;;  %v346_v27 = vpack.c.bf16 %v24_v23, %v23_v22  ;;  %v25_v28 = vld [vmem:[%s535_s1 + $0x50] sm:$0xff]  ;;  %v26_v29 = vld [vmem:[%s535_s1 + $0x58] sm:$0xff]  ;;  %v367_v30 = vpack.c.bf16 %v218_v26, %v217_v25  ;;  %v219_v31 = vld [vmem:[%s535_s1 + $0xc0] sm:$0xff] }
   0x8   :  { %338 = vmatpush3.bf16.msra.mxu0 %v337_v7  ;;  %v220_v32 = vld [vmem:[%s535_s1 + $0xc8] sm:$0xff]  ;;  %v349_v33 = vpack.c.bf16 %v26_v29, %v25_v28  ;;  %v27_v34 = vld [vmem:[%s535_s1 + $0x60] sm:$0xff]  ;;  %v221_v37 = vld [vmem:[%s535_s1 + $0xd0] sm:$0xff] }
   0x9   :  { %339 = vmatprep.subr.bf16.mxu0 %v388_v0  ;;  %v28_v35 = vld [vmem:[%s535_s1 + $0x68] sm:$0xff]  ;;  %v370_v36 = vpack.c.bf16 %v220_v32, %v219_v31  ;;  %v222_v38 = vld [vmem:[%s535_s1 + $0xd8] sm:$0xff]  ;;  %v29_v40 = vld [vmem:[%s535_s1 + $0x70] sm:$0xff] }
   0xa   :  { %362 = vmatpush3.bf16.msra.mxu1 %v361_v18  ;;  %v352_v39 = vpack.c.bf16 %v28_v35, %v27_v34  ;;  %v30_v41 = vld [vmem:[%s535_s1 + $0x78] sm:$0xff]  ;;  %v373_v42 = vpack.c.bf16 %v222_v38, %v221_v37  ;;  %v223_v43 = vld [vmem:[%s535_s1 + $0xe0] sm:$0xff]  ;;  %v224_v44 = vld [vmem:[%s535_s1 + $0xe8] sm:$0xff] }
   0xb   :  { %363 = vmatprep.subr.bf16.mxu1 %v388_v0  ;;  %v355_v45 = vpack.c.bf16 %v30_v41, %v29_v40  ;;  %v376_v46 = vpack.c.bf16 %v224_v44, %v223_v43  ;;  %v14_v47 = vld [vmem:[%s536_s0] sm:$0xff]  ;;  %v225_v48 = vld [vmem:[%s535_s1 + $0xf0] sm:$0xff]  ;;  %v226_v49 = vld [vmem:[%s535_s1 + $0xf8] sm:$0xff] }
   0xc   :  { %341 = vmatpush3.bf16.msra.mxu0 %v340_v14  ;;  %v379_v50 = vpack.c.bf16 %v226_v49, %v225_v48  ;;  %v210_v51 = vld [vmem:[%s537_s2] ss:$0 sm:$0xff]  ;;  %v227_v56 = vld [vmem:[%s537_s2 + $0x1] ss:$0 sm:$0xff] }
   0xd   :  { %342 = vmatprep.subr.bf16.mxu0 %v388_v0 }
   0xe   :  { %365 = vmatpush3.bf16.msra.mxu1 %v364_v24 }
   0xf   :  { %366 = vmatprep.subr.bf16.mxu1 %v388_v0 }
  0x10   :  { %344 = vmatpush3.bf16.msra.mxu0 %v343_v21 }
  0x11   :  { %345 = vmatprep.subr.bf16.mxu0 %v388_v0 }
  0x12   :  { %368 = vmatpush3.bf16.msra.mxu1 %v367_v30 }
  0x13   :  { %369 = vmatprep.subr.bf16.mxu1 %v388_v0 }
  0x14   :  { %347 = vmatpush3.bf16.msra.mxu0 %v346_v27 }
  0x15   :  { %348 = vmatprep.subr.bf16.mxu0 %v388_v0 }
  0x16   :  { %371 = vmatpush3.bf16.msra.mxu1 %v370_v36 }
  0x17   :  { %372 = vmatprep.subr.bf16.mxu1 %v388_v0 }
  0x18   :  { %350 = vmatpush3.bf16.msra.mxu0 %v349_v33 }
  0x19   :  { %351 = vmatprep.subr.bf16.mxu0 %v388_v0 }
  0x1a   :  { %374 = vmatpush3.bf16.msra.mxu1 %v373_v42 }
  0x1b   :  { %375 = vmatprep.subr.bf16.mxu1 %v388_v0 }
  0x1c   :  { %353 = vmatpush3.bf16.msra.mxu0 %v352_v39 }
  0x1d   :  { %354 = vmatprep.subr.bf16.mxu0 %v388_v0 }
  0x1e   :  { %377 = vmatpush3.bf16.msra.mxu1 %v376_v46 }
  0x1f   :  { %378 = vmatprep.subr.bf16.mxu1 %v388_v0 }
  0x20   :  { %356 = vmatpush3.bf16.msra.mxu0 %v355_v45 }
  0x22   :  { %380 = vmatpush3.bf16.msra.mxu1 %v379_v50 }
  0x23   :  { %296 = vmatmul.mubr.f32.vlgmr.msra.gmra.mrb[0].mxu0 %v14_v47 }
  0xf6   :  { %v102_v52 = vpop.f32.mrb[0].mxu0 }
  0xf7   :  { %v103_v53 = vadd.f32 %v210_v51, %v102_v52  ;;  %v297_v54 = vpop.f32.mrb[1].mxu0 }
  0xf9   :  { %v106_v55 = vmax.f32 %v103_v53, 0.0 }
  0xfb   :  { %331 = vmatmul.mubr.f32.vlgmr.msra.gmra.mrb[0].mxu1 %v106_v55 }
 0x1ce   :  { %v195_v57 = vpop.f32.mrb[0].mxu1 }
 0x1cf   :  { %v196_v58 = vadd.f32 %v227_v56, %v195_v57  ;;  %v332_v59 = vpop.f32.mrb[1].mxu1 }
 0x1d1   :  { %v228_v60 = vmul.f32 -1.442695, %v196_v58 }
 0x1d3   :  { %384 = vpow2.f32 %v228_v60 }
 0x1dd   :  { %v385_v61 = vpop.eup %384 }
 0x1de   :  { %v202_v62 = vadd.f32 1.0, %v385_v61 }
 0x1e0   :  { %386 = vrcp.f32 %v202_v62 }
 0x1ea   :  { %v387_v63 = vpop.eup %386 }
 0x1eb   :  { %205 = vst [vmem:[%s538_s3] sm:$0xff] %v387_v63 }

// kernel: cgan_forward.6
= control target key start
LH: loop header
LB: loop body
LE: loop exit
PB: predicated region body
PF: predicated region fallthrough
CT: control target
= control target key end

     0   :  { %v593_v0 = vmov 0.0|0.0   ;;  %v594_v4 = vmov 0.0   ;;  %vm595_vm0 = vmmov 0   ;;  %s826_s1 = inlined_call_operand.vmem [shape: f32[3,128,128], index: 1, kind: input, shape index: {}]   ;;  %s827_s4 = inlined_call_operand.vmem [shape: f32[8,128], index: 4, kind: output, shape index: {1}]   ;;  %s828_s0 = inlined_call_operand.vmem [shape: f32[8,128], index: 0, kind: input, shape index: {}]   ;;  %s829_s2 = inlined_call_operand.vmem [shape: f32[8,128], index: 2, kind: input, shape index: {}]   ;;  %s830_s3 = inlined_call_operand.vmem [shape: f32[8,128], index: 3, kind: output, shape index: {0}]  }
   0x1   :  { %518 = vmatprep.subr.bf16.mxu0 %v593_v0  ;;  %v22_v1 = vld [vmem:[%s826_s1] sm:$0xff]  ;;  %v23_v2 = vld [vmem:[%s826_s1 + $0x8] sm:$0xff]  ;;  %v24_v3 = vld [vmem:[%s826_s1 + $0x10] sm:$0xff]  ;;  %20 = vst [vmem:[%s827_s4] sm:$0xff] %v594_v4  ;;  %445 = vmatprep.mubr.msk.f32.mxu0 %vm595_vm0, %v594_v4 }
   0x2   :  { %v519_v5 = vpack.c.bf16 %v23_v2, %v22_v1  ;;  %v25_v6 = vld [vmem:[%s826_s1 + $0x18] sm:$0xff]  ;;  %542 = vmatprep.subr.bf16.mxu1 %v593_v0  ;;  %480 = vmatprep.mubr.msk.f32.mxu1 %vm595_vm0, %v594_v4  ;;  %v26_v8 = vld [vmem:[%s826_s1 + $0x20] sm:$0xff]  ;;  %v27_v9 = vld [vmem:[%s826_s1 + $0x28] sm:$0xff] }
   0x3   :  { %v522_v7 = vpack.c.bf16 %v25_v6, %v24_v3  ;;  %v328_v10 = vld [vmem:[%s826_s1 + $0x80] sm:$0xff]  ;;  %v329_v11 = vld [vmem:[%s826_s1 + $0x88] sm:$0xff]  ;;  %v330_v12 = vld [vmem:[%s826_s1 + $0x90] sm:$0xff]  ;;  %v525_v14 = vpack.c.bf16 %v27_v9, %v26_v8 }
   0x4   :  { %520 = vmatpush3.bf16.msra.mxu0 %v519_v5  ;;  %v331_v13 = vld [vmem:[%s826_s1 + $0x98] sm:$0xff]  ;;  %v543_v15 = vpack.c.bf16 %v329_v11, %v328_v10  ;;  %v28_v16 = vld [vmem:[%s826_s1 + $0x30] sm:$0xff]  ;;  %v332_v19 = vld [vmem:[%s826_s1 + $0xa0] sm:$0xff] }
   0x5   :  { %521 = vmatprep.subr.bf16.mxu0 %v593_v0  ;;  %v29_v17 = vld [vmem:[%s826_s1 + $0x38] sm:$0xff]  ;;  %v546_v18 = vpack.c.bf16 %v331_v13, %v330_v12  ;;  %v333_v20 = vld [vmem:[%s826_s1 + $0xa8] sm:$0xff]  ;;  %v30_v22 = vld [vmem:[%s826_s1 + $0x40] sm:$0xff] }
   0x6   :  { %544 = vmatpush3.bf16.msra.mxu1 %v543_v15  ;;  %v528_v21 = vpack.c.bf16 %v29_v17, %v28_v16  ;;  %v31_v23 = vld [vmem:[%s826_s1 + $0x48] sm:$0xff]  ;;  %v549_v24 = vpack.c.bf16 %v333_v20, %v332_v19  ;;  %v334_v25 = vld [vmem:[%s826_s1 + $0xb0] sm:$0xff]  ;;  %v335_v26 = vld [vmem:[%s826_s1 + $0xb8] sm:$0xff] }
   0x7   :  { %545 = vmatprep.subr.bf16.mxu1 %v593_v0  ;;  %v531_v27 = vpack.c.bf16 %v31_v23, %v30_v22  ;;  %v32_v28 = vld [vmem:[%s826_s1 + $0x50] sm:$0xff]  ;;  %v33_v29 = vld [vmem:[%s826_s1 + $0x58] sm:$0xff]  ;;  %v552_v30 = vpack.c.bf16 %v335_v26, %v334_v25  ;;  %v336_v31 = vld [vmem:[%s826_s1 + $0xc0] sm:$0xff] }
   0x8   :  { %523 = vmatpush3.bf16.msra.mxu0 %v522_v7  ;;  %v337_v32 = vld [vmem:[%s826_s1 + $0xc8] sm:$0xff]  ;;  %v534_v33 = vpack.c.bf16 %v33_v29, %v32_v28  ;;  %v34_v34 = vld [vmem:[%s826_s1 + $0x60] sm:$0xff]  ;;  %v338_v37 = vld [vmem:[%s826_s1 + $0xd0] sm:$0xff] }
   0x9   :  { %524 = vmatprep.subr.bf16.mxu0 %v593_v0  ;;  %v35_v35 = vld [vmem:[%s826_s1 + $0x68] sm:$0xff]  ;;  %v555_v36 = vpack.c.bf16 %v337_v32, %v336_v31  ;;  %v339_v38 = vld [vmem:[%s826_s1 + $0xd8] sm:$0xff]  ;;  %v36_v40 = vld [vmem:[%s826_s1 + $0x70] sm:$0xff] }
   0xa   :  { %547 = vmatpush3.bf16.msra.mxu1 %v546_v18  ;;  %v537_v39 = vpack.c.bf16 %v35_v35, %v34_v34  ;;  %v37_v41 = vld [vmem:[%s826_s1 + $0x78] sm:$0xff]  ;;  %v558_v42 = vpack.c.bf16 %v339_v38, %v338_v37  ;;  %v340_v43 = vld [vmem:[%s826_s1 + $0xe0] sm:$0xff]  ;;  %v341_v44 = vld [vmem:[%s826_s1 + $0xe8] sm:$0xff] }
   0xb   :  { %548 = vmatprep.subr.bf16.mxu1 %v593_v0  ;;  %v540_v45 = vpack.c.bf16 %v37_v41, %v36_v40  ;;  %v561_v46 = vpack.c.bf16 %v341_v44, %v340_v43  ;;  %v21_v47 = vld [vmem:[%s828_s0] sm:$0xff]  ;;  %v342_v48 = vld [vmem:[%s826_s1 + $0xf0] sm:$0xff]  ;;  %v343_v49 = vld [vmem:[%s826_s1 + $0xf8] sm:$0xff] }
   0xc   :  { %526 = vmatpush3.bf16.msra.mxu0 %v525_v14  ;;  %v564_v50 = vpack.c.bf16 %v343_v49, %v342_v48  ;;  %v345_v51 = vld [vmem:[%s826_s1 + $0x100] sm:$0xff]  ;;  %v346_v52 = vld [vmem:[%s826_s1 + $0x108] sm:$0xff]  ;;  %v347_v53 = vld [vmem:[%s826_s1 + $0x110] sm:$0xff] }
   0xd   :  { %527 = vmatprep.subr.bf16.mxu0 %v593_v0  ;;  %v567_v54 = vpack.c.bf16 %v346_v52, %v345_v51  ;;  %v348_v55 = vld [vmem:[%s826_s1 + $0x118] sm:$0xff]  ;;  %v349_v57 = vld [vmem:[%s826_s1 + $0x120] sm:$0xff]  ;;  %v350_v58 = vld [vmem:[%s826_s1 + $0x128] sm:$0xff] }
   0xe   :  { %550 = vmatpush3.bf16.msra.mxu1 %v549_v24  ;;  %v570_v56 = vpack.c.bf16 %v348_v55, %v347_v53  ;;  %v573_v59 = vpack.c.bf16 %v350_v58, %v349_v57  ;;  %v351_v60 = vld [vmem:[%s826_s1 + $0x130] sm:$0xff]  ;;  %v352_v61 = vld [vmem:[%s826_s1 + $0x138] sm:$0xff]  ;;  %v353_v63 = vld [vmem:[%s826_s1 + $0x140] sm:$0xff] }
   0xf   :  { %551 = vmatprep.subr.bf16.mxu1 %v593_v0  ;;  %v576_v62 = vpack.c.bf16 %v352_v61, %v351_v60  ;;  %v354_v1 = vld [vmem:[%s826_s1 + $0x148] sm:$0xff]  ;;  %v355_v3 = vld [vmem:[%s826_s1 + $0x150] sm:$0xff]  ;;  %v357_v6 = vld [vmem:[%s826_s1 + $0x160] sm:$0xff] }
  0x10   :  { %529 = vmatpush3.bf16.msra.mxu0 %v528_v21  ;;  %v579_v2 = vpack.c.bf16 %v354_v1, %v353_v63  ;;  %v358_v7 = vld [vmem:[%s826_s1 + $0x168] sm:$0xff]  ;;  %v327_v9 = vld [vmem:[%s829_s2] ss:$0 sm:$0xff]  ;;  %v359_v14 = vld [vmem:[%s826_s1 + $0x170] sm:$0xff] }
  0x11   :  { %530 = vmatprep.subr.bf16.mxu0 %v593_v0  ;;  %v585_v8 = vpack.c.bf16 %v358_v7, %v357_v6  ;;  %v360_v15 = vld [vmem:[%s826_s1 + $0x178] sm:$0xff]  ;;  %v361_v20 = vld [vmem:[%s829_s2 + $0x2] ss:$0 sm:$0xff]  ;;  %v300_v35 = vld [vmem:[%s827_s4] sm:$0x1] }
  0x12   :  { %553 = vmatpush3.bf16.msra.mxu1 %v552_v30  ;;  %v588_v16 = vpack.c.bf16 %v360_v15, %v359_v14  ;;  %v309_v38 = vld [vmem:[%s827_s4 + $0x1] sm:$0x1] }
  0x13   :  { %554 = vmatprep.subr.bf16.mxu1 %v593_v0 }
  0x14   :  { %532 = vmatpush3.bf16.msra.mxu0 %v531_v27 }
  0x15   :  { %533 = vmatprep.subr.bf16.mxu0 %v593_v0 }
  0x16   :  { %556 = vmatpush3.bf16.msra.mxu1 %v555_v36 }
  0x17   :  { %557 = vmatprep.subr.bf16.mxu1 %v593_v0 }
  0x18   :  { %535 = vmatpush3.bf16.msra.mxu0 %v534_v33 }
  0x19   :  { %536 = vmatprep.subr.bf16.mxu0 %v593_v0 }
  0x1a   :  { %559 = vmatpush3.bf16.msra.mxu1 %v558_v42 }
  0x1b   :  { %560 = vmatprep.subr.bf16.mxu1 %v593_v0 }
  0x1c   :  { %538 = vmatpush3.bf16.msra.mxu0 %v537_v39 }
  0x1d   :  { %539 = vmatprep.subr.bf16.mxu0 %v593_v0 }
  0x1e   :  { %562 = vmatpush3.bf16.msra.mxu1 %v561_v46 }
  0x1f   :  { %563 = vmatprep.subr.bf16.mxu1 %v593_v0 }
  0x20   :  { %541 = vmatpush3.bf16.msra.mxu0 %v540_v45 }
  0x21   :  { %566 = vmatprep.subr.bf16.mxu0 %v593_v0 }
  0x22   :  { %565 = vmatpush3.bf16.msra.mxu1 %v564_v50 }
  0x23   :  { %446 = vmatmul.mubr.f32.vlgmr.msra.gmra.mrb[0].mxu0 %v21_v47 }
  0x24   :  { %515 = vmatprep.mubr.msk.f32.mxu0 %vm595_vm0, %v594_v4  ;;  %568 = vmatpush3.bf16.msra.mxu0 %v567_v54  ;;  %v356_v4 = vld [vmem:[%s826_s1 + $0x158] sm:$0xff] }
  0x25   :  { %569 = vmatprep.subr.bf16.mxu0 %v593_v0  ;;  %v582_v5 = vpack.c.bf16 %v356_v4, %v355_v3 }
  0x28   :  { %571 = vmatpush3.bf16.msra.mxu0 %v570_v56 }
  0x29   :  { %572 = vmatprep.subr.bf16.mxu0 %v593_v0 }
  0x2c   :  { %574 = vmatpush3.bf16.msra.mxu0 %v573_v59 }
  0x2d   :  { %575 = vmatprep.subr.bf16.mxu0 %v593_v0 }
  0x30   :  { %577 = vmatpush3.bf16.msra.mxu0 %v576_v62 }
  0x31   :  { %578 = vmatprep.subr.bf16.mxu0 %v593_v0 }
  0x34   :  { %580 = vmatpush3.bf16.msra.mxu0 %v579_v2 }
  0x35   :  { %581 = vmatprep.subr.bf16.mxu0 %v593_v0 }
  0x38   :  { %583 = vmatpush3.bf16.msra.mxu0 %v582_v5 }
  0x39   :  { %584 = vmatprep.subr.bf16.mxu0 %v593_v0 }
  0x3c   :  { %586 = vmatpush3.bf16.msra.mxu0 %v585_v8 }
  0x3d   :  { %587 = vmatprep.subr.bf16.mxu0 %v593_v0  ;;  %v344_v0 = vld [vmem:[%s829_s2 + $0x1] ss:$0 sm:$0xff] }
  0x40   :  { %589 = vmatpush3.bf16.msra.mxu0 %v588_v16 }
  0xf6   :  { %v109_v10 = vpop.f32.mrb[0].mxu0 }
  0xf7   :  { %v110_v11 = vadd.f32 %v327_v9, %v109_v10  ;;  %v447_v12 = vpop.f32.mrb[1].mxu0 }
  0xf9   :  { %v113_v13 = vmax.f32 %v110_v11, 0.0 }
  0xfb   :  { %481 = vmatmul.mubr.f32.vlgmr.msra.gmra.mrb[0].mxu1 %v113_v13 }
 0x1ce   :  { %v202_v17 = vpop.f32.mrb[0].mxu1 }
 0x1cf   :  { %v203_v18 = vadd.f32 %v344_v0, %v202_v17  ;;  %v482_v19 = vpop.f32.mrb[1].mxu1 }
 0x1d1   :  { %516 = vmatmul.mubr.f32.vlgmr.msra.gmra.mrb[2].mxu0 %v203_v18 }
 0x2a4   :  { %v294_v21 = vpop.f32.mrb[2].mxu0 }
 0x2a5   :  { %v295_v22 = vadd.f32 %v361_v20, %v294_v21  ;;  %v517_v23 = vpop.f32.mrb[3].mxu0 }
 0x2a7   :  { %v298_v24 = vmax.f32 %v295_v22, 0.0 }
 0x2a9   :  { %299 = vst [vmem:[%s830_s3] sm:$0xff] %v298_v24  ;;  %v301_v25 = vrot.slane %v298_v24, 4  ;;  %v310_v26 = vmul.f32 %v298_v24, %v298_v24 }
 0x2ab   :  { %v302_v27 = vadd.f32 %v301_v25, %v298_v24  ;;  %v311_v28 = vrot.slane %v310_v26, 4 }
 0x2ad   :  { %v303_v29 = vrot.slane %v302_v27, 2  ;;  %v312_v30 = vadd.f32 %v311_v28, %v310_v26 }
 0x2af   :  { %v304_v31 = vadd.f32 %v303_v29, %v302_v27  ;;  %v313_v32 = vrot.slane %v312_v30, 2 }
 0x2b1   :  { %v305_v33 = vrot.slane %v304_v31, 1  ;;  %v314_v34 = vadd.f32 %v313_v32, %v312_v30 }
 0x2b3   :  { %v306_v36 = vadd.f32 %v305_v33, %v304_v31  ;;  %v315_v37 = vrot.slane %v314_v34, 1 }
 0x2b5   :  { %v307_v39 = vadd.f32 %v306_v36, %v300_v35  ;;  %v316_v40 = vadd.f32 %v315_v37, %v314_v34 }
 0x2b7   :  { %308 = vst [vmem:[%s827_s4] sm:$0x1] %v307_v39  ;;  %v317_v41 = vadd.f32 %v316_v40, %v309_v38 }
 0x2b9   :  { %318 = vst [vmem:[%s827_s4 + $0x1] sm:$0x1] %v317_v41 }

</bundles_post_ra>
